<compile_context>
chip_gen: v5e
topology: v5e:2x2
jax: 0.10.0
libtpu: 0.0.40
codegen_flags: <defaults>
</compile_context>

<pallas_src>
import functools

import jax
import jax.numpy as jnp
from jax import lax
from jax.experimental import pallas as pl
from jax.experimental.pallas import tpu as pltpu

_LANES = 128
_N_TRANS = 3  # first 3 pose components are translation, the rest rotation


def _pose_loss_kernel(p_ref, g_ref, out_ref, *, angle_weight, inv_batch):
    """One (D, TB) lane-dense batch tile; accumulates into an SMEM scalar."""
    i = pl.program_id(0)

    @pl.when(i == 0)
    def _init():
        out_ref[0] = jnp.float32(0.0)

    diff = p_ref[...] - g_ref[...]                       # (D, TB) f32
    # Compile-time constant weight plane: rows < 3 -> 1.0, rows >= 3 -> angle_weight,
    # with the 1/B mean factor folded in.  No weight array is DMA'd.
    row = lax.broadcasted_iota(jnp.int32, diff.shape, 0)
    w = jnp.where(row < _N_TRANS,
                  jnp.float32(inv_batch),
                  jnp.float32(angle_weight * inv_batch))
    out_ref[0] += jnp.sum(diff * diff * w)


def lietorch_pose_loss(poses, gts, angle_weight=100.0, *, max_tile_b=512):
    """Pallas TPU weighted pose loss.

    poses, gts: (B, 6) arrays.  Returns a scalar float32 loss.
    """
    poses = jnp.asarray(poses, jnp.float32)
    gts = jnp.asarray(gts, jnp.float32)
    B, D = poses.shape
    assert gts.shape == (B, D)

    # Lane-dense layout: (B, D) -> (D, B) so the batch maps to the 128-lane axis.
    p_t = poses.T
    g_t = gts.T

    # Lane-aligned batch tile.  Small batches: one 128-aligned tile; large batches:
    # tile the lane axis and accumulate across a serial "arbitrary" grid axis.
    if B <= max_tile_b:
        tb = ((B + _LANES - 1) // _LANES) * _LANES
    else:
        tb = max_tile_b
    b_pad = ((B + tb - 1) // tb) * tb
    if b_pad != B:
        pad = ((0, 0), (0, b_pad - B))
        p_t = jnp.pad(p_t, pad)   # zero pad both -> zero diff -> no contribution
        g_t = jnp.pad(g_t, pad)

    kernel = functools.partial(
        _pose_loss_kernel,
        angle_weight=float(angle_weight),
        inv_batch=1.0 / float(B),
    )

    out = pl.pallas_call(
        kernel,
        out_shape=jax.ShapeDtypeStruct((1,), jnp.float32),
        grid=(b_pad // tb,),
        in_specs=[
            pl.BlockSpec((D, tb), lambda i: (0, i)),
            pl.BlockSpec((D, tb), lambda i: (0, i)),
        ],
        out_specs=pl.BlockSpec(memory_space=pltpu.MemorySpace.SMEM),
        compiler_params=pltpu.CompilerParams(
            dimension_semantics=("arbitrary",),
        ),
    )(p_t, g_t)
    return out[0]


def _reference_loss(poses, gts, angle_weight=100.0):
    diff = poses.astype(jnp.float32) - gts.astype(jnp.float32)
    t = jnp.sum(diff[:, :3] ** 2, axis=-1)
    r = jnp.sum(diff[:, 3:] ** 2, axis=-1)
    return jnp.mean(t + angle_weight * r)


if __name__ == "__main__":
    key = jax.random.PRNGKey(0)

    # Small batch (single lane-aligned tile).
    k1, k2, k3, k4 = jax.random.split(key, 4)
    B, D = 8, 6
    poses = jax.random.normal(k1, (B, D), dtype=jnp.float32)
    gts = jax.random.normal(k2, (B, D), dtype=jnp.float32)
    loss = jax.block_until_ready(lietorch_pose_loss(poses, gts, angle_weight=100.0))
    ref = _reference_loss(poses, gts, angle_weight=100.0)
    assert jnp.allclose(loss, ref, rtol=1e-5, atol=1e-5), (loss, ref)

    # Larger batch (exercises the multi-tile accumulator path).
    B2 = 1100
    poses2 = jax.random.normal(k3, (B2, D), dtype=jnp.float32)
    gts2 = jax.random.normal(k4, (B2, D), dtype=jnp.float32)
    loss2 = jax.block_until_ready(lietorch_pose_loss(poses2, gts2, angle_weight=100.0))
    ref2 = _reference_loss(poses2, gts2, angle_weight=100.0)
    assert jnp.allclose(loss2, ref2, rtol=1e-4, atol=1e-5), (loss2, ref2)

    print("KERNEL_OK")
</pallas_src>

<mosaic_0001>
module attributes {stable_mosaic.version = 11 : i64} {
  func.func @_pose_loss_kernel(%arg0: i32, %arg1: memref<6x128xf32, #tpu.memory_space<vmem>>, %arg2: memref<6x128xf32, #tpu.memory_space<vmem>>, %arg3: memref<1xf32, #tpu.memory_space<smem>>) attributes {dimension_semantics = [#tpu.dimension_semantics<arbitrary>], iteration_bounds = array<i64: 1>, scalar_prefetch = 0 : i64, scratch_operands = 0 : i64, tpu.core_type = #tpu.core_type<tc>, window_params = [{transform_indices = @transform_0, window_bounds = array<i64: 6, 128>}, {transform_indices = @transform_1, window_bounds = array<i64: 6, 128>}, {transform_indices = @transform_2, window_bounds = array<i64: 1>}]} {
    %c0_i32 = arith.constant 0 : i32
    %0 = arith.cmpi eq, %arg0, %c0_i32 : i32
    %1 = arith.extui %0 : i1 to i32
    %c0_i32_0 = arith.constant 0 : i32
    %2 = arith.cmpi ne, %1, %c0_i32_0 : i32
    scf.if %2 {
      %cst_8 = arith.constant 0.000000e+00 : f32
      %c0_9 = arith.constant 0 : index
      %21 = memref.load %arg3[%c0_9] : memref<1xf32, #tpu.memory_space<smem>>
      memref.store %cst_8, %arg3[%c0_9] : memref<1xf32, #tpu.memory_space<smem>>
    } else {
    }
    %c0 = arith.constant 0 : index
    %c0_1 = arith.constant 0 : index
    %3 = vector.load %arg1[%c0, %c0_1] : memref<6x128xf32, #tpu.memory_space<vmem>>, vector<6x128xf32>
    %c0_2 = arith.constant 0 : index
    %c0_3 = arith.constant 0 : index
    %4 = vector.load %arg2[%c0_2, %c0_3] : memref<6x128xf32, #tpu.memory_space<vmem>>, vector<6x128xf32>
    %5 = arith.subf %3, %4 : vector<6x128xf32>
    %6 = tpu.iota {dimensions = array<i32: 0>} : vector<6x128xi32>
    %c3_i32 = arith.constant 3 : i32
    %7 = vector.broadcast %c3_i32 : i32 to vector<6x128xi32>
    %8 = arith.cmpi slt, %6, %7 : vector<6x128xi32>
    %cst = arith.constant 1.250000e-01 : f32
    %cst_4 = arith.constant 1.250000e+01 : f32
    %9 = vector.broadcast %cst : f32 to vector<6x128xf32>
    %10 = vector.broadcast %cst_4 : f32 to vector<6x128xf32>
    %11 = arith.select %8, %9, %10 : vector<6x128xi1>, vector<6x128xf32>
    %c0_5 = arith.constant 0 : index
    %12 = memref.load %arg3[%c0_5] : memref<1xf32, #tpu.memory_space<smem>>
    %13 = arith.mulf %5, %5 : vector<6x128xf32>
    %14 = arith.mulf %13, %11 : vector<6x128xf32>
    %15 = vector.shape_cast %14 : vector<6x128xf32> to vector<1x6x128xf32>
    %cst_6 = arith.constant dense<0.000000e+00> : vector<1xf32>
    %16 = vector.multi_reduction <add>, %15, %cst_6 [1, 2] : vector<1x6x128xf32> to vector<1xf32>
    %17 = vector.shape_cast %16 : vector<1xf32> to vector<1x1x1xf32>
    %18 = vector.extract %17[0, 0, 0] : f32 from vector<1x1x1xf32>
    %19 = arith.addf %12, %18 : f32
    %c0_7 = arith.constant 0 : index
    %20 = memref.load %arg3[%c0_7] : memref<1xf32, #tpu.memory_space<smem>>
    memref.store %19, %arg3[%c0_7] : memref<1xf32, #tpu.memory_space<smem>>
    return
  }
  func.func @transform_0(%arg0: i32) -> (i32, i32) {
    %c0_i32 = arith.constant 0 : i32
    %c0_i32_0 = arith.constant 0 : i32
    return %c0_i32, %arg0 : i32, i32
  }
  func.func @transform_1(%arg0: i32) -> (i32, i32) {
    %c0_i32 = arith.constant 0 : i32
    %c0_i32_0 = arith.constant 0 : i32
    return %c0_i32, %arg0 : i32, i32
  }
  func.func @transform_2(%arg0: i32) -> i32 {
    %c0_i32 = arith.constant 0 : i32
    %c0_i32_0 = arith.constant 0 : i32
    return %c0_i32 : i32
  }
}

</mosaic_0001>

<bundles_post_ra>
// kernel: tpu_custom_call.1
= control target key start
LH: loop header
LB: loop body
LE: loop exit
PB: predicated region body
PF: predicated region fallthrough
CT: control target
= control target key end

     0   :  { %7 = vsyncpa [#allocation3], 0  ;;  %s188_s0 = inlined_call_operand.hbm [shape: f32[6,128], index: 0, kind: input, shape index: {}]   ;;  %s189_s1 = inlined_call_operand.hbm [shape: f32[6,128], index: 1, kind: input, shape index: {}]   ;;  %s190_s2 = inlined_call_operand.hbm [shape: f32[1], index: 2, kind: output, shape index: {}]  }
   0x1   :  { %8 = vsyncpa [#allocation6], 0 }
   0x2   :  { %9 = vsyncpa [#allocation4], 0  ;;  %s15_s11 = sshll.u32 %s188_s0, 4  ;;  %s160_s12 = smov [#allocation2]   ;;  %s16_s11 = int_to_ptr.hbm [resolvable:$true] %s15_s11 }
   0x3   :  { %s17_s13 = sshll.u32 %s160_s12, 4  ;;  %s26_s16 = sshll.u32 %s189_s1, 4  ;;  %s18_s13 = int_to_ptr.vmem [resolvable:$true] %s17_s13  ;;  %s27_s16 = int_to_ptr.hbm [resolvable:$true] %s26_s16 }
   0x4   :  { %20 = dma.hbm_to_vmem [thread:$0]  %s16_s11, 128, %s18_s13, [#allocation3]  }
   0x5   :  { %s161_s17 = smov [#allocation5]  }
   0x6   :  { %s28_s18 = sshll.u32 %s161_s17, 4  ;;  %s29_s18 = int_to_ptr.vmem [resolvable:$true] %s28_s18 }
   0x7   :  { %31 = dma.hbm_to_vmem [thread:$0]  %s27_s16, 128, %s29_s18, [#allocation6]  }
   0x8   :  { %154 = dma.done.wait [#allocation3], 128  }
   0x9   :  { %155 = vsyncadd [#allocation3], 4294967168 }
   0xa   :  { %156 = dma.done.wait [#allocation6], 128  }
   0xb   :  { %157 = vsyncadd [#allocation6], 4294967168  ;;  %v49_v0 = vlaneseq  ;;  %v46_v2 = vld [vmem:[#allocation2] sm:$0x3f]  ;;  %v47_v3 = vld [vmem:[#allocation5] sm:$0x3f] }
   0xc   :  { %v48_v4 = vsub.f32 %v46_v2, %v47_v3  ;;  %v162_v5 = vmov 12.5   ;;  %vm56_vm1 = vcmask 1045504   ;;  %s75_s19 = sshll.u32 %s190_s2, 4  ;;  %s163_s21 = smov [#allocation7]   ;;  %s76_s19 = int_to_ptr.hbm [resolvable:$true] %s75_s19 }
   0xd   :  { %v50_v1 = vshrl.u32 %v49_v0, 7 }
   0xe   :  { %v54_v7 = vmul.f32 %v48_v4, %v48_v4 }
   0xf   :  { %vm51_vm0 = vcmp.lt.s32.totalorder %v50_v1, 3 }
  0x10   :  { %v52_v6 = vsel %vm51_vm0, 0.125, %v162_v5 }
  0x11   :  { %v55_v8 = vmul.f32 %v54_v7, %v52_v6 }
  0x13   :  { %v57_v9 = vsel %vm56_vm1, %v55_v8, 0.0 }
  0x14   :  { %58 = vadd.xlane.f32.xlu0 %v57_v9 }
  0x87   :  { %v59_v10 = vpop.xlane.xlu0 %58 }
  0x88   :  { %v60_v11 = vrot.slane %v59_v10, 4 }
  0x8a   :  { %v61_v12 = vadd.f32 %v60_v11, %v59_v10 }
  0x8c   :  { %v62_v13 = vrot.slane %v61_v12, 2 }
  0x8e   :  { %v63_v14 = vadd.f32 %v62_v13, %v61_v12 }
  0x90   :  { %v64_v15 = vrot.slane %v63_v14, 1 }
  0x92   :  { %v65_v16 = vadd.f32 %v64_v15, %v63_v14 }
  0x94   :  { %87 = vpush %v65_v16 }
  0xc5   :  { %s88_s20 = spop %87 }
  0xc6   :  { %69 = sst [smem:[#allocation7]] %s88_s20 }
  0xc7   :  { %78 = dma.smem_to_hbm %s163_s21, 16, %s76_s19, [#allocation4]  }
  0xc8   :  { %158 = dma.done.wait [#allocation4], 16  }
  0xc9   :  { %159 = vsyncadd [#allocation4], 4294967280 }
  0xca   :  { %83 = sfence }
  0xcb   :  { %84 = vsyncpa [#allocation3], 1 }
  0xcc   :  { %85 = vsyncpa [#allocation6], 1 }
  0xcd   :  { %86 = vsyncpa [#allocation4], 1 }

</bundles_post_ra>
